<compile_context>
chip_gen: v5e
topology: v5e:2x2
jax: 0.10.0
libtpu: 0.0.40
codegen_flags: <defaults>
</compile_context>

<pallas_src>
import jax
import jax.numpy as jnp
from jax.experimental import pallas as pl
from jax.experimental.pallas import tpu as pltpu


def _make_divisible(ch, divisor=8, min_ch=None):
    if min_ch is None:
        min_ch = divisor
    new_ch = max(min_ch, int(ch + divisor / 2) // divisor * divisor)
    if new_ch < 0.9 * ch:
        new_ch += divisor
    return new_ch


def _round_up(x, m):
    return (x + m - 1) // m * m


def _row_vmem_bytes(C, HWp, itemsize):
    """VMEM footprint of one batch element's (C, HWp) slab after tiling:
    sublanes pad to 8 x (32-bit packing factor), lanes pad to 128."""
    sub = 8 * max(1, 4 // itemsize)          # f32: 8, bf16: 16, int8/fp8: 32
    return _round_up(C, sub) * _round_up(HWp, 128) * itemsize


def _choose_tb(N, C, HWp, itemsize,
               max_block_bytes=8 * 1024 * 1024, max_unroll=64):
    """Pick TB = batch elements per block.

    Constraints: TB | N, block fits the ~8 MiB VMEM budget, TB <= max_unroll
    (the per-element MLP is statically unrolled).  Preference order: >= 8 grid
    steps (>= 4 per TensorCore on v7x), then >= 2 steps, then the largest block.
    TB = 1 (a single batch row) is always a legal fallback, so there is no
    full-array fallback block that could blow past VMEM on v7x.
    """
    row = _row_vmem_bytes(C, HWp, itemsize)
    cands = [tb for tb in range(1, min(N, max_unroll) + 1)
             if N % tb == 0 and tb * row <= max_block_bytes]
    if not cands:
        cands = [1]
    for min_steps in (8, 2, 1):
        ok = [tb for tb in cands if N // tb >= min_steps]
        if ok:
            return max(ok)
    return max(cands)


def _make_se_kernel(TB, inv_hw):
    def kernel(x_ref, w1t_ref, b1_ref, w2_ref, b2_ref, o_ref):
        """x_ref/o_ref: (TB, C, HW); w1t: (C, Cs); b1: (1, Cs); w2: (C, Cs); b2: (C, 1)."""
        w1t = w1t_ref[...]
        b1 = b1_ref[...]
        w2 = w2_ref[...]
        b2 = b2_ref[...]
        for t in range(TB):                                   # static unroll (TB small)
            xb = x_ref[t]                                     # (C, HW), input dtype
            # adaptive_avg_pool2d: per-channel mean, accumulated in f32.
            col = jnp.sum(xb.astype(jnp.float32), axis=-1,
                          keepdims=True) * inv_hw             # (C, 1)
            # fc1 (1x1 conv) + ReLU:  h[s] = relu(b1[s] + sum_c w1[s,c]*col[c])
            h = jnp.sum(w1t * col, axis=0, keepdims=True) + b1   # (1, Cs)
            h = jnp.maximum(h, 0.0)
            # fc2 (1x1 conv) + hardsigmoid: z[c] = b2[c] + sum_s w2[c,s]*h[s]
            z = jnp.sum(w2 * h, axis=-1, keepdims=True) + b2     # (C, 1)
            scale = jnp.clip((z + 3.0) * (1.0 / 6.0), 0.0, 1.0)  # (C, 1)
            # Broadcast over the spatial (lane) axis; multiply/store stay in the
            # input dtype (bf16 stays bf16).
            o_ref[t] = (scale.astype(xb.dtype) * xb).astype(o_ref.dtype)
    return kernel


def squeeze_excitation(x, w1, b1, w2, b2, *, donate_x=False):
    """x: (N, C, H, W); w1: (Cs, C); b1: (Cs,); w2: (C, Cs); b2: (C,)."""
    N, C, H, W = x.shape
    Cs = w1.shape[0]
    HW = H * W
    itemsize = jnp.dtype(x.dtype).itemsize

    # Lane-pad HW to a multiple of 128 only when it is large enough that
    # unmasked stores outweigh the extra DMA bytes.
    HWp = HW
    if HW % 128 != 0 and HW >= 512:
        HWp = _round_up(HW, 128)

    x3 = x.reshape(N, C, HW)
    if HWp != HW:
        x3 = jnp.pad(x3, ((0, 0), (0, 0), (0, HWp - HW)))   # zero pad: mean unaffected

    TB = _choose_tb(N, C, HWp, itemsize)
    n_blocks = N // TB
    block_vmem = TB * _row_vmem_bytes(C, HWp, itemsize)

    # Tiny weight operands (a few KB), all f32.
    w1t = jnp.asarray(w1, jnp.float32).T                      # (C, Cs)
    b1r = jnp.asarray(b1, jnp.float32).reshape(1, Cs)
    w2m = jnp.asarray(w2, jnp.float32).reshape(C, Cs)
    b2c = jnp.asarray(b2, jnp.float32).reshape(C, 1)
    weight_bytes = (w1t.size + b1r.size + w2m.size + b2c.size) * 4

    # Double-buffered input + output blocks + weights + margin; stays <= ~36 MiB
    # with the 8 MiB block budget (safe on v7x's 64 MiB physical VMEM).
    vmem_limit = max(16 * 1024 * 1024,
                     4 * block_vmem + weight_bytes + 2 * 1024 * 1024)

    bytes_accessed = 2 * N * C * HWp * itemsize + weight_bytes
    flops = 2 * N * C * HW + 4 * N * C * Cs

    kernel = _make_se_kernel(TB, 1.0 / HW)   # true 1/(H*W) even when padded

    out3 = pl.pallas_call(
        kernel,
        out_shape=jax.ShapeDtypeStruct((N, C, HWp), x.dtype),
        grid_spec=pltpu.PrefetchScalarGridSpec(
            num_scalar_prefetch=0,
            grid=(n_blocks,),
            in_specs=[
                pl.BlockSpec((TB, C, HWp), lambda i: (i, 0, 0)),
                pl.BlockSpec((C, Cs), lambda i: (0, 0)),
                pl.BlockSpec((1, Cs), lambda i: (0, 0)),
                pl.BlockSpec((C, Cs), lambda i: (0, 0)),
                pl.BlockSpec((C, 1), lambda i: (0, 0)),
            ],
            out_specs=pl.BlockSpec((TB, C, HWp), lambda i: (i, 0, 0)),
        ),
        compiler_params=pltpu.CompilerParams(
            dimension_semantics=("parallel",),
            vmem_limit_bytes=int(vmem_limit)),
        cost_estimate=pl.CostEstimate(
            flops=int(flops), transcendentals=0,
            bytes_accessed=int(bytes_accessed)),
        input_output_aliases=({0: 0} if donate_x else {}),
    )(x3, w1t, b1r, w2m, b2c)

    if HWp != HW:
        out3 = out3[:, :, :HW]
    return out3.reshape(N, C, H, W)


def _reference(x, w1, b1, w2, b2):
    pooled = jnp.mean(x, axis=(2, 3), keepdims=True)            # (N, C, 1, 1)
    h = jnp.einsum('sc,ncij->nsij', w1, pooled) + b1[None, :, None, None]
    h = jnp.maximum(h, 0.0)
    s = jnp.einsum('cs,nsij->ncij', w2, h) + b2[None, :, None, None]
    s = jnp.clip((s + 3.0) / 6.0, 0.0, 1.0)
    return s * x


if __name__ == "__main__":
    N, C, H, W = 2, 4, 16, 16
    squeeze_c = _make_divisible(C // 4, 8)   # -> 8

    key = jax.random.PRNGKey(0)
    kx, k1, k2, k3, k4 = jax.random.split(key, 5)

    x = jax.random.normal(kx, (N, C, H, W), dtype=jnp.float32)
    # fc1: Conv2d(C, squeeze_c, 1) -> weight (squeeze_c, C, 1, 1), bias (squeeze_c,)
    w1 = jax.random.normal(k1, (squeeze_c, C), dtype=jnp.float32) * 0.1
    b1 = jax.random.normal(k2, (squeeze_c,), dtype=jnp.float32) * 0.1
    # fc2: Conv2d(squeeze_c, C, 1) -> weight (C, squeeze_c, 1, 1), bias (C,)
    w2 = jax.random.normal(k3, (C, squeeze_c), dtype=jnp.float32) * 0.1
    b2 = jax.random.normal(k4, (C,), dtype=jnp.float32) * 0.1

    out = squeeze_excitation(x, w1, b1, w2, b2)
    out = jax.block_until_ready(out)

    ref = _reference(x, w1, b1, w2, b2)
    assert jnp.allclose(out, ref, atol=1e-5, rtol=1e-5), "mismatch vs reference"

    print("KERNEL_OK")
</pallas_src>

<mosaic_0001>
module attributes {stable_mosaic.version = 11 : i64} {
  func.func @kernel(%arg0: i32, %arg1: memref<1x4x256xf32, #tpu.memory_space<vmem>>, %arg2: memref<4x8xf32, #tpu.memory_space<vmem>>, %arg3: memref<1x8xf32, #tpu.memory_space<vmem>>, %arg4: memref<4x8xf32, #tpu.memory_space<vmem>>, %arg5: memref<4x1xf32, #tpu.memory_space<vmem>>, %arg6: memref<1x4x256xf32, #tpu.memory_space<vmem>>) attributes {dimension_semantics = [#tpu.dimension_semantics<parallel>], iteration_bounds = array<i64: 2>, scalar_prefetch = 0 : i64, scratch_operands = 0 : i64, tpu.core_type = #tpu.core_type<tc>, window_params = [{transform_indices = @transform_0, window_bounds = array<i64: 1, 4, 256>}, {pipeline_mode = #tpu.pipeline_mode<synchronous>, transform_indices = @transform_1, window_bounds = array<i64: 4, 8>}, {pipeline_mode = #tpu.pipeline_mode<synchronous>, transform_indices = @transform_2, window_bounds = array<i64: 1, 8>}, {pipeline_mode = #tpu.pipeline_mode<synchronous>, transform_indices = @transform_3, window_bounds = array<i64: 4, 8>}, {pipeline_mode = #tpu.pipeline_mode<synchronous>, transform_indices = @transform_4, window_bounds = array<i64: 4, 1>}, {transform_indices = @transform_5, window_bounds = array<i64: 1, 4, 256>}]} {
    %c0 = arith.constant 0 : index
    %c0_0 = arith.constant 0 : index
    %0 = vector.load %arg2[%c0, %c0_0] : memref<4x8xf32, #tpu.memory_space<vmem>>, vector<4x8xf32>
    %c0_1 = arith.constant 0 : index
    %c0_2 = arith.constant 0 : index
    %1 = vector.load %arg3[%c0_1, %c0_2] : memref<1x8xf32, #tpu.memory_space<vmem>>, vector<1x8xf32>
    %c0_3 = arith.constant 0 : index
    %c0_4 = arith.constant 0 : index
    %2 = vector.load %arg4[%c0_3, %c0_4] : memref<4x8xf32, #tpu.memory_space<vmem>>, vector<4x8xf32>
    %c0_5 = arith.constant 0 : index
    %c0_6 = arith.constant 0 : index
    %3 = vector.load %arg5[%c0_5, %c0_6] : memref<4x1xf32, #tpu.memory_space<vmem>>, vector<4x1xf32>
    %c0_7 = arith.constant 0 : index
    %c0_8 = arith.constant 0 : index
    %c0_9 = arith.constant 0 : index
    %4 = vector.load %arg1[%c0_7, %c0_8, %c0_9] : memref<1x4x256xf32, #tpu.memory_space<vmem>>, vector<1x4x256xf32>
    %5 = vector.shape_cast %4 : vector<1x4x256xf32> to vector<4x256xf32>
    %cst = arith.constant dense<0.000000e+00> : vector<4xf32>
    %6 = vector.multi_reduction <add>, %5, %cst [1] : vector<4x256xf32> to vector<4xf32>
    %7 = vector.shape_cast %6 : vector<4xf32> to vector<4x1xf32>
    %cst_10 = arith.constant 3.906250e-03 : f32
    %8 = vector.broadcast %cst_10 : f32 to vector<4x1xf32>
    %9 = arith.mulf %7, %8 : vector<4x1xf32>
    %10 = vector.broadcast %9 : vector<4x1xf32> to vector<4x8xf32>
    %11 = arith.mulf %0, %10 : vector<4x8xf32>
    %cst_11 = arith.constant dense<0.000000e+00> : vector<8xf32>
    %12 = vector.multi_reduction <add>, %11, %cst_11 [0] : vector<4x8xf32> to vector<8xf32>
    %13 = vector.shape_cast %12 : vector<8xf32> to vector<1x8xf32>
    %14 = arith.addf %13, %1 : vector<1x8xf32>
    %cst_12 = arith.constant 0.000000e+00 : f32
    %15 = vector.broadcast %cst_12 : f32 to vector<1x8xf32>
    %16 = arith.maximumf %14, %15 : vector<1x8xf32>
    %17 = vector.broadcast %16 : vector<1x8xf32> to vector<4x8xf32>
    %18 = arith.mulf %2, %17 : vector<4x8xf32>
    %cst_13 = arith.constant dense<0.000000e+00> : vector<4xf32>
    %19 = vector.multi_reduction <add>, %18, %cst_13 [1] : vector<4x8xf32> to vector<4xf32>
    %20 = vector.shape_cast %19 : vector<4xf32> to vector<4x1xf32>
    %21 = arith.addf %20, %3 : vector<4x1xf32>
    %cst_14 = arith.constant 3.000000e+00 : f32
    %22 = vector.broadcast %cst_14 : f32 to vector<4x1xf32>
    %23 = arith.addf %21, %22 : vector<4x1xf32>
    %cst_15 = arith.constant 0.166666672 : f32
    %24 = vector.broadcast %cst_15 : f32 to vector<4x1xf32>
    %25 = arith.mulf %23, %24 : vector<4x1xf32>
    %cst_16 = arith.constant 0.000000e+00 : f32
    %cst_17 = arith.constant 1.000000e+00 : f32
    %26 = vector.broadcast %cst_16 : f32 to vector<4x1xf32>
    %27 = arith.maximumf %26, %25 : vector<4x1xf32>
    %28 = vector.broadcast %cst_17 : f32 to vector<4x1xf32>
    %29 = arith.minimumf %28, %27 : vector<4x1xf32>
    %30 = vector.broadcast %29 : vector<4x1xf32> to vector<4x256xf32>
    %31 = arith.mulf %30, %5 : vector<4x256xf32>
    %c0_18 = arith.constant 0 : index
    %c0_19 = arith.constant 0 : index
    %c0_20 = arith.constant 0 : index
    %32 = vector.load %arg6[%c0_18, %c0_19, %c0_20] : memref<1x4x256xf32, #tpu.memory_space<vmem>>, vector<1x4x256xf32>
    %33 = vector.shape_cast %32 : vector<1x4x256xf32> to vector<4x256xf32>
    %34 = vector.shape_cast %31 : vector<4x256xf32> to vector<1x4x256xf32>
    tpu.vector_store %arg6[%c0_18, %c0_19, %c0_20], %34 {strides = array<i32>} : memref<1x4x256xf32, #tpu.memory_space<vmem>>, vector<1x4x256xf32>,
    return
  }
  func.func @transform_0(%arg0: i32) -> (i32, i32, i32) {
    %c0_i32 = arith.constant 0 : i32
    %c0_i32_0 = arith.constant 0 : i32
    %c0_i32_1 = arith.constant 0 : i32
    return %arg0, %c0_i32, %c0_i32_0 : i32, i32, i32
  }
  func.func @transform_1(%arg0: i32) -> (i32, i32) {
    %c0_i32 = arith.constant 0 : i32
    %c0_i32_0 = arith.constant 0 : i32
    %c0_i32_1 = arith.constant 0 : i32
    return %c0_i32, %c0_i32_0 : i32, i32
  }
  func.func @transform_2(%arg0: i32) -> (i32, i32) {
    %c0_i32 = arith.constant 0 : i32
    %c0_i32_0 = arith.constant 0 : i32
    %c0_i32_1 = arith.constant 0 : i32
    return %c0_i32, %c0_i32_0 : i32, i32
  }
  func.func @transform_3(%arg0: i32) -> (i32, i32) {
    %c0_i32 = arith.constant 0 : i32
    %c0_i32_0 = arith.constant 0 : i32
    %c0_i32_1 = arith.constant 0 : i32
    return %c0_i32, %c0_i32_0 : i32, i32
  }
  func.func @transform_4(%arg0: i32) -> (i32, i32) {
    %c0_i32 = arith.constant 0 : i32
    %c0_i32_0 = arith.constant 0 : i32
    %c0_i32_1 = arith.constant 0 : i32
    return %c0_i32, %c0_i32_0 : i32, i32
  }
  func.func @transform_5(%arg0: i32) -> (i32, i32, i32) {
    %c0_i32 = arith.constant 0 : i32
    %c0_i32_0 = arith.constant 0 : i32
    %c0_i32_1 = arith.constant 0 : i32
    return %arg0, %c0_i32, %c0_i32_0 : i32, i32, i32
  }
}

</mosaic_0001>

<bundles_post_ra>
// kernel: tpu_custom_call.1
= control target key start
LH: loop header
LB: loop body
LE: loop exit
PB: predicated region body
PF: predicated region fallthrough
CT: control target
= control target key end

     0   :  { %10 = vsyncpa [#allocation3], 0  ;;  %s808_s0 = inlined_call_operand.hbm [shape: f32[2,4,256], index: 0, kind: input, shape index: {}]   ;;  %s809_s1 = inlined_call_operand.vmem [shape: f32[4,8], index: 1, kind: input, shape index: {}]   ;;  %s810_s2 = inlined_call_operand.vmem [shape: f32[1,8], index: 2, kind: input, shape index: {}]   ;;  %s811_s3 = inlined_call_operand.hbm [shape: f32[4,8], index: 3, kind: input, shape index: {}]   ;;  %s812_s4 = inlined_call_operand.vmem [shape: f32[4,1], index: 4, kind: input, shape index: {}]   ;;  %s813_s5 = inlined_call_operand.hbm [shape: f32[2,4,256], index: 5, kind: output, shape index: {}]  }
   0x1   :  { %12 = vsyncpa [#allocation3 + $0x1], 0 }
   0x2   :  { %13 = vsyncpa [#allocation6], 0 }
   0x3   :  { %14 = vsyncpa [#allocation4], 0 }
   0x4   :  { %16 = vsyncpa [#allocation4 + $0x1], 0  ;;  %s654_s18 = smov 0   ;;  %s656_s19 = smov 0  }
   0x5   :  { %s658_s20 = smov 0   ;;  %s660_s21 = smov 0  }
   0x6 LB: > { %s675_s22 = sadd.s32 4294967295, %s620_s21   ;;  %s412_s23 = sadd.s32 4294967294, %s620_s21   ;;  %s620_s21 = sphi %s660_s21, %s823_s21   ;;  %s616_s20 = sphi %s658_s20, %s822_s20   ;;  %s612_s19 = sphi %s656_s19, %s821_s19   ;;  %s608_s18 = sphi %s654_s18, %s820_s18  }
   0x7   : > { %p42_p0 = scmp.ne.s32.totalorder %s612_s19, %s608_s18  ;;  %p43_p1 = scmp.eq.s32.totalorder %s675_s22, 0 }
   0x8   : > { %p150_p2 = scmp.eq.s32.totalorder %s675_s22, 1  ;;  %p156_p3 = scmp.eq.s32.totalorder %s412_s23, 1 }
   0x9   : > { %p684_p4 = por %p43_p1, %p42_p0  ;;  %p413_p5 = scmp.ge.s32.totalorder %s620_s21, 1 }
   0xa   : > { %p689_p6 = por %p156_p3, %p42_p0  ;;  %p163_p7 = scmp.lt.s32.totalorder %s620_s21, 3 }
   0xb   : > { %s181_s28 = sshll.u32 %s811_s3, 4  ;;  %s622_s30 = smov [#allocation5]   ;;  %s182_s28 = int_to_ptr.hbm [resolvable:$true] %s181_s28 }
   0xc   : > { %p697_p8 = pnand %p413_p5, %p163_p7  ;;  %s183_s6 = sshll.u32 %s622_s30, 4  ;;  %s184_s6 = int_to_ptr.vmem [resolvable:$true] %s183_s6 }
   0xd   : > { %s707_s7 = sadd.s32 1, %s620_s21   ;;  %s29_s8 = sadd.s32 1, %s616_s20 }
   0xe   : > { %p438_p10 = pneg %p697_p8  ;;  %s26_s9 = ssub.s32 %s620_s21, %s707_s7 }
   0xf   : > { %p27_p12 = scmp.eq.s32.totalorder %s26_s9, 0  ;;  %p36_p13 = scmp.ne.s32.totalorder %s616_s20, %s612_s19 }
  0x10   : > { %p439_p11 = pnand %p438_p10, %p43_p1  ;;  %p37_p0 = scmp.eq.s32.totalorder %s620_s21, 0 }
  0x11   : > { %s716_s10 = scalar_select %p27_p12, %s616_s20, %s29_s8  }
  0x12   : > { %441 = dma.hbm_to_vmem [thread:$0]  (!%p439_p11), %s182_s28, 64, %s184_s6, [#allocation6]  }
  0x13   : > { %p720_p3 = por %p150_p2, %p36_p13  ;;  %p451_p5 = scmp.lt.s32.totalorder %s620_s21, 2 }
  0x14   : > { %s197_s12 = sand.u32 1, %s616_s20   ;;  %s428_s13 = sshll.u32 %s620_s21, 3 }
  0x15   : > { %p38_p7 = por %p37_p0, %p36_p13  ;;  %s416_s14 = sshll.u32 %s197_s12, 3 }
  0x16   : > { %s206_s17 = scalar_lea.hbm %s808_s0, %s428_s13  ;;  %s201_s26 = scalar_lea.vmem [#allocation2], %s416_s14 }
  0x17   : > { %s208_s23 = sshll.u32 %s206_s17, 4  ;;  %s210_s27 = sshll.u32 %s201_s26, 4  ;;  %s209_s23 = int_to_ptr.hbm [resolvable:$true] %s208_s23  ;;  %s211_s27 = int_to_ptr.vmem [resolvable:$true] %s210_s27 }
  0x18   : > { %p730_p10 = pnand %p451_p5, %p38_p7  ;;  %s198_s30 = scalar_lea.sflag [#allocation3], %s197_s12 }
  0x19   : > { %s520_s6 = sshra.s32 %s209_s23, 4  ;;  %s527_s14 = scalar_lea.hbm %s808_s0, 16  ;;  %s521_s6 = int_to_ptr.hbm [resolvable:$true] %s520_s6 }
  0x1a   : > { %s522_s8 = scalar_lea.hbm %s521_s6, 8  ;;  %p524_p11 = pneg %p730_p10 }
  0x1b   : > { %p523_p2 = scmp.ne.s32.totalorder %s521_s6, %s522_s8  ;;  %p528_p0 = scmp.lt.s32.totalorder %s521_s6, %s808_s0 }
  0x1c   : > { %p529_p5 = scmp.lt.s32.totalorder %s527_s14, %s522_s8 }
  0x1d   : > { %p525_p12 = pnand %p524_p11, %p523_p2 }
  0x1e   : > { %p530_p7 = por %p529_p5, %p528_p0 }
  0x1f   : > { %p526_p13 = pneg %p525_p12 }
  0x21   : > { %p531_p9 = pnand %p530_p7, %p526_p13 }
  0x23   : > { %534 = shalt.err (!%p531_p9)
}
  0x24   : > { %445 = dma.hbm_to_vmem [thread:$0]  (!%p730_p10), %s209_s23, 128, %s211_s27, %s198_s30  }
  0x25   : > { %219 = sbr.rel (%p697_p8) target bundleno = 448 (0x1c0), region = 40  ;;  %s747_s12 = sand.u32 (!%p697_p8), 1, %s612_s19  }
  0x26   : > { %s420_s17 = sshll.u32 (!%p697_p8), %s747_s12, 3  ;;  %s222_s26 = scalar_lea.sflag (!%p697_p8), [#allocation3], %s747_s12 }
  0x27   : > { %s225_s6 = scalar_lea.vmem (!%p697_p8), [#allocation2], %s420_s17 }
  0x2a   : > { %595 = dma.done.wait (%p684_p4), %s222_s26, 128  }
  0x2b   : > { %597 = vsyncadd (%p684_p4), %s222_s26, 4294967168 }
  0x2c   : > { %599 = dma.done.wait (%p43_p1), [#allocation6], 64  }
  0x2d   : > { %601 = vsyncadd (%p43_p1), [#allocation6], 4294967232  ;;  %v262_v0 = vld [vmem:[%s225_s6] sm:$0xff]  ;;  %vm269_vm0 = vcmask 1043456   ;;  %v258_v7 = vld [vmem:[%s809_s1] sm:$0xf] }
  0x2e   : > { %264 = vst [vmem:[#allocation1] ss:$2 sm:$0xff] %v262_v0  ;;  %vm277_vm1 = vcmask 60416   ;;  %v259_v16 = vld [vmem:[%s810_s2] sm:$0x1]  ;;  %v623_v24 = vmov 0  }
  0x2f   : > { %v260_v20 = vld [vmem:[#allocation5] sm:$0xf]  ;;  %488 = vset.pattern.permute.xlu1 %v623_v24  ;;  %489 = vset.pattern.permute.xlu0 %v623_v24  ;;  %v261_v25 = vld [vmem:[%s812_s4] sm:$0xf]  ;;  %s429_s8 = sshll.u32 %s675_s22, 3  ;;  %s257_s15 = scalar_lea.vmem [#allocation7], %s420_s17 }
  0x30   : > { %s327_s14 = scalar_lea.hbm %s813_s5, %s429_s8  ;;  %s329_s16 = sshll.u32 %s257_s15, 4  ;;  %s330_s16 = int_to_ptr.vmem [resolvable:$true] %s329_s16 }
  0x31   : > { %s331_s26 = sshll.u32 %s327_s14, 4  ;;  %s316_s22 = scalar_lea.sflag [#allocation4], %s747_s12  ;;  %s332_s26 = int_to_ptr.hbm [resolvable:$true] %s331_s26 }
  0x32   : > { %s564_s6 = sshra.s32 %s332_s26, 4  ;;  %s570_s17 = scalar_lea.hbm %s813_s5, 16  ;;  %s565_s6 = int_to_ptr.hbm [resolvable:$true] %s564_s6 }
  0x33   : > { %s566_s24 = scalar_lea.hbm %s565_s6, 8  ;;  %p571_p9 = scmp.lt.s32.totalorder %s565_s6, %s813_s5 }
  0x34   : > { %p567_p1 = scmp.ne.s32.totalorder %s565_s6, %s566_s24  ;;  %p572_p10 = scmp.lt.s32.totalorder %s570_s17, %s566_s24 }
  0x35   : > { %v265_v1 = vld.sshfl [vmem:[#allocation1] sm:$0xff pattern:$0x75316420]  ;;  %v266_v2 = vld.sshfl [vmem:[#allocation1 + $0x8] sm:$0xff pattern:$0x75316420] }
  0x36   : > { %v270_v3 = vsel %vm269_vm0, %v265_v1, 0.0  ;;  %v271_v4 = vsel %vm269_vm0, %v266_v2, 0.0  ;;  %302 = vst [vmem:[#allocation1] ss:$2 sm:$0xff] %v262_v0  ;;  %p568_p4 = pnand %p567_p1, %p720_p3  ;;  %p573_p2 = por %p572_p10, %p571_p9 }
  0x37   : > { %v272_v5 = vadd.f32 %v271_v4, %v270_v3 }
  0x38   : > { %p569_p8 = pneg %p568_p4 }
  0x39   : > { %273 = vadd.xlane.f32.xlu0 %v272_v5 }
  0x3a   : > { %p574_p11 = pnand %p573_p2, %p569_p8 }
  0x3d   : > { %v304_v32 = vld.sshfl [vmem:[#allocation1 + $0x8] sm:$0xff pattern:$0x75316420]  ;;  %v303_v33 = vld.sshfl [vmem:[#allocation1] sm:$0xff pattern:$0x75316420] }
  0xac   : > { %v274_v6 = vpop.xlane.xlu0 %273 }
  0xad   : > { %v275_v8 = vmul.f32 0.00390625, %v274_v6 }
  0xaf   : > { %v276_v9 = vmul.f32 %v275_v8, %v258_v7 }
  0xb1   : > { %v278_v10 = vsel %vm277_vm1, %v276_v9, 0.0 }
  0xb2   : > { %v279_v11 = vrot.slane %v278_v10, 4 }
  0xb4   : > { %v280_v12 = vadd.f32 %v279_v11, %v278_v10 }
  0xb6   : > { %v281_v13 = vrot.slane %v280_v12, 2 }
  0xb8   : > { %v282_v14 = vadd.f32 %v281_v13, %v280_v12 }
  0xba   : > { %v283_v15 = vrot.slane %v282_v14, 1 }
  0xbc   : > { %v284_v17 = vadd.f32 %v283_v15, %v282_v14 }
  0xbe   : > { %v285_v18 = vadd.f32 %v284_v17, %v259_v16 }
  0xc0   : > { %v286_v19 = vmax.f32 %v285_v18, 0.0 }
  0xc2   : > { %v287_v21 = vperm.slane %v286_v19, 0 }
  0xc4   : > { %v288_v22 = vmul.f32 %v287_v21, %v260_v20 }
  0xc6   : > { %v289_v23 = vsel %vm277_vm1, %v288_v22, 0.0 }
  0xc7   : > { %290 = vadd.xlane.f32.xlu0 %v289_v23 }
 0x13a   : > { %v291_v26 = vpop.xlane.xlu0 %290 }
 0x13b   : > { %v292_v27 = vadd.f32 %v291_v26, %v261_v25 }
 0x13d   : > { %v293_v28 = vadd.f32 3.0, %v292_v27 }
 0x13f   : > { %v294_v29 = vmul.f32 0.16666667, %v293_v28 }
 0x141   : > { %v295_v30 = vmax.f32 %v294_v29, 0.0 }
 0x143   : > { %v296_v31 = vmin.f32 %v295_v30, 1.0 }
 0x145   : > { %299 = vperm.xlu1 %488, %v296_v31  }
 0x1b7   : > { %v300_v34 = vpop.permute.xlu1 %299 }
 0x1b8   : > { %v308_v35 = vmul.f32 %v304_v32, %v300_v34  ;;  %v307_v36 = vmul.f32 %v303_v33, %v300_v34 }
 0x1ba   : > { %v311_v37 = vrot.slane %v308_v35, 4 }
 0x1bc   : > { %v312_v38 = vsel %vm269_vm0, %v307_v36, %v311_v37 }
 0x1bd   : > { %314 = vst [vmem:[%s257_s15] sm:$0xff] %v312_v38 }
 0x1be   : > { %577 = shalt.err (!%p574_p11)
}
 0x1bf   : > { %436 = dma.vmem_to_hbm [thread:$0]  (%p720_p3), %s330_s16, 128, %s332_s26, %s316_s22  }
 0x1c0 PF: > { %s343_s12 = sand.u32 1, %s608_s18   ;;  %p819_p12 = scmp.ge.s32.totalorder %s620_s21, 2 }
 0x1c1   : > { %s344_s30 = scalar_lea.sflag [#allocation4], %s343_s12 }
 0x1c2   : > { %p447_p13 = pnand %p819_p12, %p689_p6 }
 0x1c4   : > { %p448_p0 = pneg %p447_p13 }
 0x1c6   : > { %603 = dma.done.wait (%p448_p0), %s344_s30, 128  }
 0x1c7   : > { %605 = vsyncadd (%p448_p0), %s344_s30, 4294967168  ;;  %p19_p5 = scmp.ge.s32.totalorder %s707_s7, 4   ;;  %s820_s18 = smov %s612_s19 }
 0x1c8   : > { %s821_s19 = smov %s616_s20  ;;  %s822_s20 = smov %s716_s10 }
 0x1c9   : > { %s823_s21 = smov %s707_s7  ;;  %21 = sbr.rel (!%p19_p5) target bundleno = 6 (0x6), region = 89 }
 0x1ce   :  { %350 = vsyncpa [#allocation3], 1 }
 0x1cf   :  { %352 = vsyncpa [#allocation3 + $0x1], 1 }
 0x1d0   :  { %353 = vsyncpa [#allocation6], 1 }
 0x1d1   :  { %354 = vsyncpa [#allocation4], 1 }
 0x1d2   :  { %356 = vsyncpa [#allocation4 + $0x1], 1 }

</bundles_post_ra>
